<compile_context>
chip_gen: v5e
topology: v5e:2x2
jax: 0.10.0
libtpu: 0.0.40
codegen_flags: <defaults>
</compile_context>

<pallas_src>
import jax
import jax.numpy as jnp
from jax.experimental import pallas as pl
from jax.experimental.pallas import tpu as pltpu

_LANES = 128      # vreg lane width
_SUBLANES = 8     # f32 sublanes


def _round_up(v, m):
    return (v + m - 1) // m * m


# --------------------------------------------------------------------------
# Kernel
# --------------------------------------------------------------------------
def _mdlstm_kernel(comb_ref, c0_ref, c1_ref, w_ref, b_ref,
                   wci_ref, wf1_ref, wf2_ref, wco_ref, out_ref):
    Hp = wci_ref.shape[-1]                      # padded hidden dim (mult of 128)

    # Single fused gate projection: one wide-K MXU pass (f32 accumulation).
    gates = jnp.dot(comb_ref[...], w_ref[...],
                    preferred_element_type=jnp.float32) + b_ref[...]

    c0 = c0_ref[...]
    c1 = c1_ref[...]

    # Lane-aligned gate slices (Hp is a multiple of 128 -> pure VPU, no XLU).
    i_t = gates[:, 0 * Hp:1 * Hp]
    f1_t = gates[:, 1 * Hp:2 * Hp]
    f2_t = gates[:, 2 * Hp:3 * Hp]
    g_t = gates[:, 3 * Hp:4 * Hp]
    o_t = gates[:, 4 * Hp:5 * Hp]

    i_g = jax.nn.sigmoid(i_t + wci_ref[...] * (c0 + c1))
    f1_g = jax.nn.sigmoid(f1_t + wf1_ref[...] * c0)
    f2_g = jax.nn.sigmoid(f2_t + wf2_ref[...] * c1)
    c_next = f1_g * c0 + f2_g * c1 + i_g * jnp.tanh(g_t)
    o_g = jax.nn.sigmoid(o_t + wco_ref[...] * c_next)
    h_next = o_g * jnp.tanh(c_next)

    # One lane-dense store stream: [h_next | c_next] packed along lanes.
    out_ref[:, 0:Hp] = h_next
    out_ref[:, Hp:2 * Hp] = c_next


# --------------------------------------------------------------------------
# One-time parameter packing (lane-aligned, optionally bf16 weights)
# --------------------------------------------------------------------------
def prepare_params(params, channel_size, hidden_dim, compute_dtype=jnp.float32):
    """Pack W/b/peepholes into lane-aligned padded layouts. Done once."""
    C, H = channel_size, hidden_dim
    C_pad = _round_up(max(C, 1), _LANES)
    H_pad = _round_up(max(H, 1), _LANES)
    K_pad = C_pad + 2 * H_pad

    W = params["W"]                # [C + 2H, 5H], stored [in, out]
    b = params["b"]                # [5H]

    # Rows: x -> [0:C), h0 -> [C_pad:C_pad+H), h1 -> [C_pad+H_pad:...+H)
    # Cols: gate g -> [g*H_pad : g*H_pad + H)
    Wp = jnp.zeros((K_pad, 5 * H_pad), jnp.float32)
    row_blocks = ((0, C, 0), (C, C + H, C_pad), (C + H, C + 2 * H, C_pad + H_pad))
    for (r0, r1, rd) in row_blocks:
        for g in range(5):
            Wp = Wp.at[rd:rd + (r1 - r0), g * H_pad:g * H_pad + H].set(
                W[r0:r1, g * H:(g + 1) * H])

    bp = jnp.zeros((1, 5 * H_pad), jnp.float32)
    for g in range(5):
        bp = bp.at[0, g * H_pad:g * H_pad + H].set(b[g * H:(g + 1) * H])

    def pad_peep(p):
        return jnp.zeros((1, H_pad), jnp.float32).at[:, :H].set(
            p.astype(jnp.float32))

    return {
        "W": Wp.astype(compute_dtype),     # MXU operand (bf16 on v6e/v7x)
        "b": bp,                           # f32
        "Wci": pad_peep(params["Wci"]),
        "Wf1": pad_peep(params["Wf1"]),
        "Wf2": pad_peep(params["Wf2"]),
        "Wco": pad_peep(params["Wco"]),
        "C": C, "H": H,
        "C_pad": C_pad, "H_pad": H_pad, "K_pad": K_pad,
        "compute_dtype": compute_dtype,
    }


# --------------------------------------------------------------------------
# Per-step forward wrapper
# --------------------------------------------------------------------------
def mdlstm_cell_forward(x, h, c, prep):
    """x: [B, C]; h, c: [2, B, H]. Returns (h_next, c_next), each [B, H] f32."""
    B = x.shape[0]
    C, H = prep["C"], prep["H"]
    C_pad, H_pad, K_pad = prep["C_pad"], prep["H_pad"], prep["K_pad"]
    cdt = prep["compute_dtype"]

    # Batch (M) tiling: sublane-aligned, capped at 128 rows (MXU height).
    if B <= 128:
        block_m = _round_up(B, _SUBLANES)
        B_pad = block_m
    else:
        block_m = 128
        B_pad = _round_up(B, 128)
    grid_m = B_pad // block_m

    def pad2(a, rows, cols):
        return jnp.pad(a, ((0, rows - a.shape[0]), (0, cols - a.shape[1])))

    # Fused, lane-padded MXU operand [x | h0 | h1]; padded region is zeros and
    # matches the zero rows inserted into the packed weight.
    combined = jnp.concatenate(
        [pad2(x, B_pad, C_pad), pad2(h[0], B_pad, H_pad), pad2(h[1], B_pad, H_pad)],
        axis=1).astype(cdt)
    c0 = pad2(c[0], B_pad, H_pad).astype(jnp.float32)
    c1 = pad2(c[1], B_pad, H_pad).astype(jnp.float32)

    # Explicit VMEM budget: resident W + double-buffered activation tiles,
    # capped at 32 MiB so the same tiling stays valid on v7x (64 MiB VMEM).
    w_bytes = K_pad * 5 * H_pad * jnp.dtype(cdt).itemsize
    act_bytes = block_m * (K_pad * jnp.dtype(cdt).itemsize + 4 * H_pad * 4)
    vmem_limit = int(min(max(2 * (w_bytes + 2 * act_bytes) + (4 << 20), 8 << 20),
                         32 << 20))

    out = pl.pallas_call(
        _mdlstm_kernel,
        out_shape=jax.ShapeDtypeStruct((B_pad, 2 * H_pad), jnp.float32),
        grid=(grid_m,),
        in_specs=[
            pl.BlockSpec((block_m, K_pad), lambda m: (m, 0)),    # [x|h0|h1]
            pl.BlockSpec((block_m, H_pad), lambda m: (m, 0)),    # c0
            pl.BlockSpec((block_m, H_pad), lambda m: (m, 0)),    # c1
            pl.BlockSpec((K_pad, 5 * H_pad), lambda m: (0, 0)),  # W (VMEM-resident)
            pl.BlockSpec((1, 5 * H_pad), lambda m: (0, 0)),      # bias
            pl.BlockSpec((1, H_pad), lambda m: (0, 0)),          # Wci
            pl.BlockSpec((1, H_pad), lambda m: (0, 0)),          # Wf1
            pl.BlockSpec((1, H_pad), lambda m: (0, 0)),          # Wf2
            pl.BlockSpec((1, H_pad), lambda m: (0, 0)),          # Wco
        ],
        out_specs=pl.BlockSpec((block_m, 2 * H_pad), lambda m: (m, 0)),
        compiler_params=pltpu.CompilerParams(
            dimension_semantics=("parallel",),
            vmem_limit_bytes=vmem_limit),
    )(combined, c0, c1, prep["W"], prep["b"],
      prep["Wci"], prep["Wf1"], prep["Wf2"], prep["Wco"])

    h_next = out[:B, :H]
    c_next = out[:B, H_pad:H_pad + H]
    return h_next, c_next


# --------------------------------------------------------------------------
# Plain-JAX reference (mirrors the PyTorch forward exactly) + init
# --------------------------------------------------------------------------
def mdlstm_reference(x, h, c, params):
    H = params["Wci"].shape[-1]
    combined = jnp.concatenate([x, h[0], h[1]], axis=1)
    gates = combined @ params["W"] + params["b"]
    i_t, f1_t, f2_t, g_t, o_t = [gates[:, k * H:(k + 1) * H] for k in range(5)]
    Wci, Wf1, Wf2, Wco = (params["Wci"], params["Wf1"], params["Wf2"], params["Wco"])
    i_g = jax.nn.sigmoid(i_t + Wci * c[0] + Wci * c[1])
    f1_g = jax.nn.sigmoid(f1_t + Wf1 * c[0])
    f2_g = jax.nn.sigmoid(f2_t + Wf2 * c[1])
    c_next = f1_g * c[0] + f2_g * c[1] + i_g * jnp.tanh(g_t)
    o_g = jax.nn.sigmoid(o_t + Wco * c_next)
    h_next = o_g * jnp.tanh(c_next)
    return h_next, c_next


def init_params(key, channel_size, hidden_dim):
    """Deterministic init matching nn.Linear defaults + uniform_ peepholes."""
    in_features = 2 * hidden_dim + channel_size
    out_features = 5 * hidden_dim
    k = 1.0 / jnp.sqrt(in_features)
    k_w, k_b, k1, k2, k3, k4 = jax.random.split(key, 6)
    return {
        # stored [in, out] (transposed vs torch Linear weight [out, in])
        "W": jax.random.uniform(k_w, (in_features, out_features),
                                jnp.float32, -k, k),
        "b": jax.random.uniform(k_b, (out_features,), jnp.float32, -k, k),
        "Wci": jax.random.uniform(k1, (1, hidden_dim), jnp.float32, 0.0, 1.0),
        "Wf1": jax.random.uniform(k2, (1, hidden_dim), jnp.float32, 0.0, 1.0),
        "Wf2": jax.random.uniform(k3, (1, hidden_dim), jnp.float32, 0.0, 1.0),
        "Wco": jax.random.uniform(k4, (1, hidden_dim), jnp.float32, 0.0, 1.0),
    }


if __name__ == "__main__":
    B, C, H = 8, 4, 32
    key = jax.random.PRNGKey(0)
    k_p, k_x, k_h, k_c = jax.random.split(key, 4)

    params = init_params(k_p, C, H)
    x = jax.random.normal(k_x, (B, C), jnp.float32)
    h = jax.random.normal(k_h, (2, B, H), jnp.float32)
    c = jax.random.normal(k_c, (2, B, H), jnp.float32)

    h_ref, c_ref = mdlstm_reference(x, h, c, params)

    # f32 path (exactness check)
    prep_f32 = prepare_params(params, C, H, compute_dtype=jnp.float32)
    h32, c32 = jax.block_until_ready(mdlstm_cell_forward(x, h, c, prep_f32))
    assert jnp.allclose(h32, h_ref, atol=3e-5, rtol=3e-5)
    assert jnp.allclose(c32, c_ref, atol=3e-5, rtol=3e-5)

    # bf16 MXU path (the v6e/v7x throughput/bandwidth lever); elementwise math
    # stays f32 inside the kernel, so only matmul operands are narrowed.
    prep_bf16 = prepare_params(params, C, H, compute_dtype=jnp.bfloat16)
    h16, c16 = jax.block_until_ready(mdlstm_cell_forward(x, h, c, prep_bf16))
    assert jnp.allclose(h16, h_ref, atol=1e-1, rtol=1e-1)
    assert jnp.allclose(c16, c_ref, atol=1e-1, rtol=1e-1)

    print("KERNEL_OK")
</pallas_src>

<mosaic_0001>
module attributes {stable_mosaic.version = 11 : i64} {
  func.func @_mdlstm_kernel(%arg0: i32, %arg1: memref<8x384xf32, #tpu.memory_space<vmem>>, %arg2: memref<8x128xf32, #tpu.memory_space<vmem>>, %arg3: memref<8x128xf32, #tpu.memory_space<vmem>>, %arg4: memref<384x640xf32, #tpu.memory_space<vmem>>, %arg5: memref<1x640xf32, #tpu.memory_space<vmem>>, %arg6: memref<1x128xf32, #tpu.memory_space<vmem>>, %arg7: memref<1x128xf32, #tpu.memory_space<vmem>>, %arg8: memref<1x128xf32, #tpu.memory_space<vmem>>, %arg9: memref<1x128xf32, #tpu.memory_space<vmem>>, %arg10: memref<8x256xf32, #tpu.memory_space<vmem>>) attributes {dimension_semantics = [#tpu.dimension_semantics<parallel>], iteration_bounds = array<i64: 1>, scalar_prefetch = 0 : i64, scratch_operands = 0 : i64, tpu.core_type = #tpu.core_type<tc>, window_params = [{transform_indices = @transform_0, window_bounds = array<i64: 8, 384>}, {transform_indices = @transform_1, window_bounds = array<i64: 8, 128>}, {transform_indices = @transform_2, window_bounds = array<i64: 8, 128>}, {pipeline_mode = #tpu.pipeline_mode<synchronous>, transform_indices = @transform_3, window_bounds = array<i64: 384, 640>}, {pipeline_mode = #tpu.pipeline_mode<synchronous>, transform_indices = @transform_4, window_bounds = array<i64: 1, 640>}, {pipeline_mode = #tpu.pipeline_mode<synchronous>, transform_indices = @transform_5, window_bounds = array<i64: 1, 128>}, {pipeline_mode = #tpu.pipeline_mode<synchronous>, transform_indices = @transform_6, window_bounds = array<i64: 1, 128>}, {pipeline_mode = #tpu.pipeline_mode<synchronous>, transform_indices = @transform_7, window_bounds = array<i64: 1, 128>}, {pipeline_mode = #tpu.pipeline_mode<synchronous>, transform_indices = @transform_8, window_bounds = array<i64: 1, 128>}, {transform_indices = @transform_9, window_bounds = array<i64: 8, 256>}]} {
    %c0 = arith.constant 0 : index
    %c0_0 = arith.constant 0 : index
    %0 = vector.load %arg1[%c0, %c0_0] : memref<8x384xf32, #tpu.memory_space<vmem>>, vector<8x384xf32>
    %c0_1 = arith.constant 0 : index
    %c0_2 = arith.constant 0 : index
    %1 = vector.load %arg4[%c0_1, %c0_2] : memref<384x640xf32, #tpu.memory_space<vmem>>, vector<384x640xf32>
    %cst = arith.constant dense<0.000000e+00> : vector<8x640xf32>
    %2 = tpu.matmul %0, %1, %cst {dimension_numbers = #tpu.dot_dimension_numbers<[1], [0], [0], [1], [0, 0, 1, 1], [], []>} : vector<8x384xf32>, vector<384x640xf32>, vector<8x640xf32> -> vector<8x640xf32>
    %c0_3 = arith.constant 0 : index
    %c0_4 = arith.constant 0 : index
    %3 = vector.load %arg5[%c0_3, %c0_4] : memref<1x640xf32, #tpu.memory_space<vmem>>, vector<1x640xf32>
    %4 = vector.broadcast %3 : vector<1x640xf32> to vector<8x640xf32>
    %5 = arith.addf %2, %4 : vector<8x640xf32>
    %c0_5 = arith.constant 0 : index
    %c0_6 = arith.constant 0 : index
    %6 = vector.load %arg2[%c0_5, %c0_6] : memref<8x128xf32, #tpu.memory_space<vmem>>, vector<8x128xf32>
    %c0_7 = arith.constant 0 : index
    %c0_8 = arith.constant 0 : index
    %7 = vector.load %arg3[%c0_7, %c0_8] : memref<8x128xf32, #tpu.memory_space<vmem>>, vector<8x128xf32>
    %8 = vector.extract_strided_slice %5 {offsets = [0, 0], sizes = [8, 128], strides = [1, 1]} : vector<8x640xf32> to vector<8x128xf32>
    %9 = vector.extract_strided_slice %5 {offsets = [0, 128], sizes = [8, 128], strides = [1, 1]} : vector<8x640xf32> to vector<8x128xf32>
    %10 = vector.extract_strided_slice %5 {offsets = [0, 256], sizes = [8, 128], strides = [1, 1]} : vector<8x640xf32> to vector<8x128xf32>
    %11 = vector.extract_strided_slice %5 {offsets = [0, 384], sizes = [8, 128], strides = [1, 1]} : vector<8x640xf32> to vector<8x128xf32>
    %12 = vector.extract_strided_slice %5 {offsets = [0, 512], sizes = [8, 128], strides = [1, 1]} : vector<8x640xf32> to vector<8x128xf32>
    %c0_9 = arith.constant 0 : index
    %c0_10 = arith.constant 0 : index
    %13 = vector.load %arg6[%c0_9, %c0_10] : memref<1x128xf32, #tpu.memory_space<vmem>>, vector<1x128xf32>
    %14 = arith.addf %6, %7 : vector<8x128xf32>
    %15 = vector.broadcast %13 : vector<1x128xf32> to vector<8x128xf32>
    %16 = arith.mulf %15, %14 : vector<8x128xf32>
    %17 = arith.addf %8, %16 : vector<8x128xf32>
    %18 = arith.negf %17 : vector<8x128xf32>
    %19 = math.exp %18 : vector<8x128xf32>
    %cst_11 = arith.constant 1.000000e+00 : f32
    %20 = vector.broadcast %cst_11 : f32 to vector<8x128xf32>
    %21 = arith.addf %20, %19 : vector<8x128xf32>
    %22 = arith.divf %20, %21 : vector<8x128xf32>
    %c0_12 = arith.constant 0 : index
    %c0_13 = arith.constant 0 : index
    %23 = vector.load %arg7[%c0_12, %c0_13] : memref<1x128xf32, #tpu.memory_space<vmem>>, vector<1x128xf32>
    %24 = vector.broadcast %23 : vector<1x128xf32> to vector<8x128xf32>
    %25 = arith.mulf %24, %6 : vector<8x128xf32>
    %26 = arith.addf %9, %25 : vector<8x128xf32>
    %27 = arith.negf %26 : vector<8x128xf32>
    %28 = math.exp %27 : vector<8x128xf32>
    %cst_14 = arith.constant 1.000000e+00 : f32
    %29 = vector.broadcast %cst_14 : f32 to vector<8x128xf32>
    %30 = arith.addf %29, %28 : vector<8x128xf32>
    %31 = arith.divf %29, %30 : vector<8x128xf32>
    %c0_15 = arith.constant 0 : index
    %c0_16 = arith.constant 0 : index
    %32 = vector.load %arg8[%c0_15, %c0_16] : memref<1x128xf32, #tpu.memory_space<vmem>>, vector<1x128xf32>
    %33 = vector.broadcast %32 : vector<1x128xf32> to vector<8x128xf32>
    %34 = arith.mulf %33, %7 : vector<8x128xf32>
    %35 = arith.addf %10, %34 : vector<8x128xf32>
    %36 = arith.negf %35 : vector<8x128xf32>
    %37 = math.exp %36 : vector<8x128xf32>
    %cst_17 = arith.constant 1.000000e+00 : f32
    %38 = vector.broadcast %cst_17 : f32 to vector<8x128xf32>
    %39 = arith.addf %38, %37 : vector<8x128xf32>
    %40 = arith.divf %38, %39 : vector<8x128xf32>
    %41 = arith.mulf %31, %6 : vector<8x128xf32>
    %42 = arith.mulf %40, %7 : vector<8x128xf32>
    %43 = arith.addf %41, %42 : vector<8x128xf32>
    %44 = math.tanh %11 : vector<8x128xf32>
    %45 = arith.mulf %22, %44 : vector<8x128xf32>
    %46 = arith.addf %43, %45 : vector<8x128xf32>
    %c0_18 = arith.constant 0 : index
    %c0_19 = arith.constant 0 : index
    %47 = vector.load %arg9[%c0_18, %c0_19] : memref<1x128xf32, #tpu.memory_space<vmem>>, vector<1x128xf32>
    %48 = vector.broadcast %47 : vector<1x128xf32> to vector<8x128xf32>
    %49 = arith.mulf %48, %46 : vector<8x128xf32>
    %50 = arith.addf %12, %49 : vector<8x128xf32>
    %51 = arith.negf %50 : vector<8x128xf32>
    %52 = math.exp %51 : vector<8x128xf32>
    %cst_20 = arith.constant 1.000000e+00 : f32
    %53 = vector.broadcast %cst_20 : f32 to vector<8x128xf32>
    %54 = arith.addf %53, %52 : vector<8x128xf32>
    %55 = arith.divf %53, %54 : vector<8x128xf32>
    %56 = math.tanh %46 : vector<8x128xf32>
    %57 = arith.mulf %55, %56 : vector<8x128xf32>
    %c0_21 = arith.constant 0 : index
    %c0_22 = arith.constant 0 : index
    %58 = vector.load %arg10[%c0_21, %c0_22] : memref<8x256xf32, #tpu.memory_space<vmem>>, vector<8x128xf32>
    tpu.vector_store %arg10[%c0_21, %c0_22], %57 {strides = array<i32>} : memref<8x256xf32, #tpu.memory_space<vmem>>, vector<8x128xf32>,
    %c0_23 = arith.constant 0 : index
    %c128 = arith.constant 128 : index
    %59 = vector.load %arg10[%c0_23, %c128] : memref<8x256xf32, #tpu.memory_space<vmem>>, vector<8x128xf32>
    tpu.vector_store %arg10[%c0_23, %c128], %46 {strides = array<i32>} : memref<8x256xf32, #tpu.memory_space<vmem>>, vector<8x128xf32>,
    return
  }
  func.func @transform_0(%arg0: i32) -> (i32, i32) {
    %c0_i32 = arith.constant 0 : i32
    %c0_i32_0 = arith.constant 0 : i32
    return %arg0, %c0_i32 : i32, i32
  }
  func.func @transform_1(%arg0: i32) -> (i32, i32) {
    %c0_i32 = arith.constant 0 : i32
    %c0_i32_0 = arith.constant 0 : i32
    return %arg0, %c0_i32 : i32, i32
  }
  func.func @transform_2(%arg0: i32) -> (i32, i32) {
    %c0_i32 = arith.constant 0 : i32
    %c0_i32_0 = arith.constant 0 : i32
    return %arg0, %c0_i32 : i32, i32
  }
  func.func @transform_3(%arg0: i32) -> (i32, i32) {
    %c0_i32 = arith.constant 0 : i32
    %c0_i32_0 = arith.constant 0 : i32
    %c0_i32_1 = arith.constant 0 : i32
    return %c0_i32, %c0_i32_0 : i32, i32
  }
  func.func @transform_4(%arg0: i32) -> (i32, i32) {
    %c0_i32 = arith.constant 0 : i32
    %c0_i32_0 = arith.constant 0 : i32
    %c0_i32_1 = arith.constant 0 : i32
    return %c0_i32, %c0_i32_0 : i32, i32
  }
  func.func @transform_5(%arg0: i32) -> (i32, i32) {
    %c0_i32 = arith.constant 0 : i32
    %c0_i32_0 = arith.constant 0 : i32
    %c0_i32_1 = arith.constant 0 : i32
    return %c0_i32, %c0_i32_0 : i32, i32
  }
  func.func @transform_6(%arg0: i32) -> (i32, i32) {
    %c0_i32 = arith.constant 0 : i32
    %c0_i32_0 = arith.constant 0 : i32
    %c0_i32_1 = arith.constant 0 : i32
    return %c0_i32, %c0_i32_0 : i32, i32
  }
  func.func @transform_7(%arg0: i32) -> (i32, i32) {
    %c0_i32 = arith.constant 0 : i32
    %c0_i32_0 = arith.constant 0 : i32
    %c0_i32_1 = arith.constant 0 : i32
    return %c0_i32, %c0_i32_0 : i32, i32
  }
  func.func @transform_8(%arg0: i32) -> (i32, i32) {
    %c0_i32 = arith.constant 0 : i32
    %c0_i32_0 = arith.constant 0 : i32
    %c0_i32_1 = arith.constant 0 : i32
    return %c0_i32, %c0_i32_0 : i32, i32
  }
  func.func @transform_9(%arg0: i32) -> (i32, i32) {
    %c0_i32 = arith.constant 0 : i32
    %c0_i32_0 = arith.constant 0 : i32
    return %arg0, %c0_i32 : i32, i32
  }
}

</mosaic_0001>

<bundles_post_ra>
// kernel: tpu_custom_call.1
= control target key start
LH: loop header
LB: loop body
LE: loop exit
PB: predicated region body
PF: predicated region fallthrough
CT: control target
= control target key end

     0   :  { %14 = vsyncpa [#allocation3], 0  ;;  %s1117_s0 = inlined_call_operand.hbm [shape: f32[8,384], index: 0, kind: input, shape index: {}]   ;;  %s1118_s1 = inlined_call_operand.hbm [shape: f32[8,128], index: 1, kind: input, shape index: {}]   ;;  %s1119_s2 = inlined_call_operand.hbm [shape: f32[8,128], index: 2, kind: input, shape index: {}]   ;;  %s1120_s3 = inlined_call_operand.hbm [shape: f32[384,640], index: 3, kind: input, shape index: {}]   ;;  %s1121_s4 = inlined_call_operand.hbm [shape: f32[1,640], index: 4, kind: input, shape index: {}]   ;;  %s1122_s5 = inlined_call_operand.vmem [shape: f32[1,128], index: 5, kind: input, shape index: {}]   ;;  %s1123_s6 = inlined_call_operand.vmem [shape: f32[1,128], index: 6, kind: input, shape index: {}]   ;;  %s1124_s7 = inlined_call_operand.vmem [shape: f32[1,128], index: 7, kind: input, shape index: {}]   ;;  %s1125_s8 = inlined_call_operand.vmem [shape: f32[1,128], index: 8, kind: input, shape index: {}]   ;;  %s1126_s9 = inlined_call_operand.hbm [shape: f32[8,256], index: 9, kind: output, shape index: {}]  }
   0x1   :  { %15 = vsyncpa [#allocation6], 0 }
   0x2   :  { %16 = vsyncpa [#allocation9], 0  ;;  %s34_s11 = sshll.u32 %s1118_s1, 4  ;;  %s35_s11 = int_to_ptr.hbm [resolvable:$true] %s34_s11 }
   0x3   :  { %17 = vsyncpa [#allocation4], 0  ;;  %s978_s12 = smov [#allocation5]   ;;  %s55_s16 = sshll.u32 %s1120_s3, 4  ;;  %s56_s16 = int_to_ptr.hbm [resolvable:$true] %s55_s16 }
   0x4   :  { %s36_s13 = sshll.u32 %s978_s12, 4  ;;  %s979_s17 = smov [#allocation8]   ;;  %s37_s13 = int_to_ptr.vmem [resolvable:$true] %s36_s13 }
   0x5   :  { %39 = dma.hbm_to_vmem [thread:$0]  %s35_s11, 128, %s37_s13, [#allocation6]  }
   0x6   :  { %s57_s18 = sshll.u32 %s979_s17, 4  ;;  %s980_s19 = smov 640   ;;  %s58_s18 = int_to_ptr.vmem [resolvable:$true] %s57_s18 }
   0x7   :  { %s981_s20 = smov 40   ;;  %s23_s1 = sshll.u32 %s1117_s0, 4  ;;  %s24_s1 = int_to_ptr.hbm [resolvable:$true] %s23_s1 }
   0x8   :  { %63 = dma.hbm_to_vmem [thread:$0]  %s56_s16, 30720, %s58_s18, [#allocation9], %s980_s19, %s980_s19, %s981_s20  }
   0x9   :  { %s982_s23 = smov [#allocation2]   ;;  %s45_s3 = sshll.u32 %s1119_s2, 4  ;;  %s46_s3 = int_to_ptr.hbm [resolvable:$true] %s45_s3 }
   0xa   :  { %s25_s24 = sshll.u32 %s982_s23, 4  ;;  %s983_s27 = smov [#allocation7]   ;;  %s26_s24 = int_to_ptr.vmem [resolvable:$true] %s25_s24 }
   0xb   :  { %28 = dma.hbm_to_vmem [thread:$0]  %s24_s1, 384, %s26_s24, [#allocation3]  }
   0xc   :  { %s47_s28 = sshll.u32 %s983_s27, 4  ;;  %s69_s10 = sshll.u32 %s1121_s4, 4  ;;  %s48_s28 = int_to_ptr.vmem [resolvable:$true] %s47_s28  ;;  %s70_s10 = int_to_ptr.hbm [resolvable:$true] %s69_s10 }
   0xd   :  { %50 = dma.hbm_to_vmem [thread:$0]  %s46_s3, 128, %s48_s28, [#allocation6]  }
   0xe   :  { %s984_s0 = smov [#allocation10]  }
   0xf   :  { %s71_s11 = sshll.u32 %s984_s0, 4  ;;  %s72_s11 = int_to_ptr.vmem [resolvable:$true] %s71_s11 }
  0x10   :  { %74 = dma.hbm_to_vmem [thread:$0]  %s70_s10, 80, %s72_s11, [#allocation9]  }
  0x11   :  { %970 = dma.done.wait [#allocation3], 384  }
  0x12   :  { %971 = vsyncadd [#allocation3], 4294966912 }
  0x13   :  { %972 = dma.done.wait [#allocation6], 256  }
  0x14   :  { %973 = vsyncadd [#allocation6], 4294967040 }
  0x15   :  { %974 = dma.done.wait [#allocation9], 30800  }
  0x16   :  { %975 = vsyncadd [#allocation9], 4294936496  ;;  %v181_v0 = vld [vmem:[#allocation8 + $0x258] sm:$0xff]  ;;  %v176_v2 = vld [vmem:[#allocation8 + $0x230] sm:$0xff]  ;;  %s778_s18 = sshll.u32 %s1126_s9, 4  ;;  %s779_s18 = int_to_ptr.hbm [resolvable:$true] %s778_s18 }
  0x17   :  { %v341_v1 = vld [vmem:[#allocation8 + $0x758] sm:$0xff]  ;;  %358 = vmatpush.msra.mxu0 %v181_v0  ;;  %v336_v3 = vld [vmem:[#allocation8 + $0x730] sm:$0xff]  ;;  %v182_v4 = vld [vmem:[#allocation8 + $0x260] sm:$0xff] }
  0x18   :  { %398 = vmatpush.msra.mxu2 %v341_v1  ;;  %v171_v5 = vld [vmem:[#allocation8 + $0x208] sm:$0xff]  ;;  %418 = vmatpush.msra.mxu3 %v182_v4  ;;  %v261_v6 = vld [vmem:[#allocation8 + $0x4d8] sm:$0xff]  ;;  %v256_v9 = vld [vmem:[#allocation8 + $0x4b0] sm:$0xff] }
  0x19   :  { %v331_v7 = vld [vmem:[#allocation8 + $0x708] sm:$0xff]  ;;  %v177_v8 = vld [vmem:[#allocation8 + $0x238] sm:$0xff]  ;;  %359 = vmatpush.msra.mxu0 %v176_v2  ;;  %378 = vmatpush.msra.mxu1 %v261_v6  ;;  %v166_v10 = vld [vmem:[#allocation8 + $0x1e0] sm:$0xff] }
  0x1a   :  { %399 = vmatpush.msra.mxu2 %v336_v3  ;;  %419 = vmatpush.msra.mxu3 %v177_v8  ;;  %v326_v11 = vld [vmem:[#allocation8 + $0x6e0] sm:$0xff]  ;;  %v172_v12 = vld [vmem:[#allocation8 + $0x210] sm:$0xff]  ;;  %v251_v13 = vld [vmem:[#allocation8 + $0x488] sm:$0xff] }
  0x1b   :  { %360 = vmatpush.msra.mxu0 %v171_v5  ;;  %v167_v14 = vld [vmem:[#allocation8 + $0x1e8] sm:$0xff]  ;;  %379 = vmatpush.msra.mxu1 %v256_v9  ;;  %v161_v15 = vld [vmem:[#allocation8 + $0x1b8] sm:$0xff]  ;;  %v246_v17 = vld [vmem:[#allocation8 + $0x460] sm:$0xff] }
  0x1c   :  { %400 = vmatpush.msra.mxu2 %v331_v7  ;;  %420 = vmatpush.msra.mxu3 %v172_v12  ;;  %v321_v16 = vld [vmem:[#allocation8 + $0x6b8] sm:$0xff]  ;;  %v162_v18 = vld [vmem:[#allocation8 + $0x1c0] sm:$0xff]  ;;  %v156_v19 = vld [vmem:[#allocation8 + $0x190] sm:$0xff] }
  0x1d   :  { %361 = vmatpush.msra.mxu0 %v166_v10  ;;  %380 = vmatpush.msra.mxu1 %v251_v13  ;;  %v316_v20 = vld [vmem:[#allocation8 + $0x690] sm:$0xff]  ;;  %v241_v21 = vld [vmem:[#allocation8 + $0x438] sm:$0xff]  ;;  %v151_v23 = vld [vmem:[#allocation8 + $0x168] sm:$0xff] }
  0x1e   :  { %401 = vmatpush.msra.mxu2 %v326_v11  ;;  %421 = vmatpush.msra.mxu3 %v167_v14  ;;  %v157_v22 = vld [vmem:[#allocation8 + $0x198] sm:$0xff]  ;;  %v311_v24 = vld [vmem:[#allocation8 + $0x668] sm:$0xff]  ;;  %v236_v25 = vld [vmem:[#allocation8 + $0x410] sm:$0xff] }
  0x1f   :  { %362 = vmatpush.msra.mxu0 %v161_v15  ;;  %381 = vmatpush.msra.mxu1 %v246_v17  ;;  %v152_v26 = vld [vmem:[#allocation8 + $0x170] sm:$0xff]  ;;  %v146_v27 = vld [vmem:[#allocation8 + $0x140] sm:$0xff]  ;;  %v231_v29 = vld [vmem:[#allocation8 + $0x3e8] sm:$0xff] }
  0x20   :  { %402 = vmatpush.msra.mxu2 %v321_v16  ;;  %422 = vmatpush.msra.mxu3 %v162_v18  ;;  %v306_v28 = vld [vmem:[#allocation8 + $0x640] sm:$0xff]  ;;  %v147_v30 = vld [vmem:[#allocation8 + $0x148] sm:$0xff]  ;;  %v141_v31 = vld [vmem:[#allocation8 + $0x118] sm:$0xff] }
  0x21   :  { %363 = vmatpush.msra.mxu0 %v156_v19  ;;  %382 = vmatpush.msra.mxu1 %v241_v21  ;;  %v301_v32 = vld [vmem:[#allocation8 + $0x618] sm:$0xff]  ;;  %v226_v33 = vld [vmem:[#allocation8 + $0x3c0] sm:$0xff]  ;;  %v136_v35 = vld [vmem:[#allocation8 + $0xf0] sm:$0xff] }
  0x22   :  { %403 = vmatpush.msra.mxu2 %v316_v20  ;;  %423 = vmatpush.msra.mxu3 %v157_v22  ;;  %v142_v34 = vld [vmem:[#allocation8 + $0x120] sm:$0xff]  ;;  %v296_v36 = vld [vmem:[#allocation8 + $0x5f0] sm:$0xff]  ;;  %v221_v37 = vld [vmem:[#allocation8 + $0x398] sm:$0xff] }
  0x23   :  { %364 = vmatpush.msra.mxu0 %v151_v23  ;;  %383 = vmatpush.msra.mxu1 %v236_v25  ;;  %v137_v38 = vld [vmem:[#allocation8 + $0xf8] sm:$0xff]  ;;  %v131_v39 = vld [vmem:[#allocation8 + $0xc8] sm:$0xff]  ;;  %v216_v41 = vld [vmem:[#allocation8 + $0x370] sm:$0xff] }
  0x24   :  { %404 = vmatpush.msra.mxu2 %v311_v24  ;;  %424 = vmatpush.msra.mxu3 %v152_v26  ;;  %v291_v40 = vld [vmem:[#allocation8 + $0x5c8] sm:$0xff]  ;;  %v132_v42 = vld [vmem:[#allocation8 + $0xd0] sm:$0xff]  ;;  %v126_v43 = vld [vmem:[#allocation8 + $0xa0] sm:$0xff] }
  0x25   :  { %365 = vmatpush.msra.mxu0 %v146_v27  ;;  %384 = vmatpush.msra.mxu1 %v231_v29  ;;  %v286_v44 = vld [vmem:[#allocation8 + $0x5a0] sm:$0xff]  ;;  %v211_v45 = vld [vmem:[#allocation8 + $0x348] sm:$0xff]  ;;  %v121_v47 = vld [vmem:[#allocation8 + $0x78] sm:$0xff] }
  0x26   :  { %405 = vmatpush.msra.mxu2 %v306_v28  ;;  %425 = vmatpush.msra.mxu3 %v147_v30  ;;  %v127_v46 = vld [vmem:[#allocation8 + $0xa8] sm:$0xff]  ;;  %v281_v48 = vld [vmem:[#allocation8 + $0x578] sm:$0xff]  ;;  %v206_v49 = vld [vmem:[#allocation8 + $0x320] sm:$0xff] }
  0x27   :  { %366 = vmatpush.msra.mxu0 %v141_v31  ;;  %385 = vmatpush.msra.mxu1 %v226_v33  ;;  %v122_v50 = vld [vmem:[#allocation8 + $0x80] sm:$0xff]  ;;  %v116_v51 = vld [vmem:[#allocation8 + $0x50] sm:$0xff]  ;;  %v201_v53 = vld [vmem:[#allocation8 + $0x2f8] sm:$0xff] }
  0x28   :  { %406 = vmatpush.msra.mxu2 %v301_v32  ;;  %426 = vmatpush.msra.mxu3 %v142_v34  ;;  %v276_v52 = vld [vmem:[#allocation8 + $0x550] sm:$0xff]  ;;  %v117_v54 = vld [vmem:[#allocation8 + $0x58] sm:$0xff]  ;;  %v111_v55 = vld [vmem:[#allocation8 + $0x28] sm:$0xff] }
  0x29   :  { %367 = vmatpush.msra.mxu0 %v136_v35  ;;  %386 = vmatpush.msra.mxu1 %v221_v37  ;;  %v271_v56 = vld [vmem:[#allocation8 + $0x528] sm:$0xff]  ;;  %v196_v57 = vld [vmem:[#allocation8 + $0x2d0] sm:$0xff]  ;;  %v106_v59 = vld [vmem:[#allocation8] sm:$0xff] }
  0x2a   :  { %407 = vmatpush.msra.mxu2 %v296_v36  ;;  %427 = vmatpush.msra.mxu3 %v137_v38  ;;  %v112_v58 = vld [vmem:[#allocation8 + $0x30] sm:$0xff]  ;;  %v266_v60 = vld [vmem:[#allocation8 + $0x500] sm:$0xff]  ;;  %v183_v62 = vld [vmem:[#allocation8 + $0x268] sm:$0xff] }
  0x2b   :  { %368 = vmatpush.msra.mxu0 %v131_v39  ;;  %387 = vmatpush.msra.mxu1 %v216_v41  ;;  %v262_v61 = vld [vmem:[#allocation8 + $0x4e0] sm:$0xff]  ;;  %v191_v63 = vld [vmem:[#allocation8 + $0x2a8] sm:$0xff]  ;;  %v257_v1 = vld [vmem:[#allocation8 + $0x4b8] sm:$0xff] }
  0x2c   :  { %408 = vmatpush.msra.mxu2 %v291_v40  ;;  %428 = vmatpush.msra.mxu3 %v132_v42  ;;  %v107_v0 = vld [vmem:[#allocation8 + $0x8] sm:$0xff]  ;;  %v178_v2 = vld [vmem:[#allocation8 + $0x240] sm:$0xff]  ;;  %v252_v5 = vld [vmem:[#allocation8 + $0x490] sm:$0xff] }
  0x2d   :  { %369 = vmatpush.msra.mxu0 %v126_v43  ;;  %388 = vmatpush.msra.mxu1 %v211_v45  ;;  %v263_v3 = vld [vmem:[#allocation8 + $0x4e8] sm:$0xff]  ;;  %v186_v4 = vld [vmem:[#allocation8 + $0x280] sm:$0xff]  ;;  %v173_v7 = vld [vmem:[#allocation8 + $0x218] sm:$0xff] }
  0x2e   :  { %409 = vmatpush.msra.mxu2 %v286_v44  ;;  %429 = vmatpush.msra.mxu3 %v127_v46  ;;  %v342_v6 = vld [vmem:[#allocation8 + $0x760] sm:$0xff]  ;;  %v247_v9 = vld [vmem:[#allocation8 + $0x468] sm:$0xff]  ;;  %v337_v10 = vld [vmem:[#allocation8 + $0x738] sm:$0xff] }
  0x2f   :  { %370 = vmatpush.msra.mxu0 %v121_v47  ;;  %389 = vmatpush.msra.mxu1 %v206_v49  ;;  %v258_v8 = vld [vmem:[#allocation8 + $0x4c0] sm:$0xff]  ;;  %v168_v11 = vld [vmem:[#allocation8 + $0x1f0] sm:$0xff]  ;;  %v253_v12 = vld [vmem:[#allocation8 + $0x498] sm:$0xff] }
  0x30   :  { %410 = vmatpush.msra.mxu2 %v281_v48  ;;  %430 = vmatpush.msra.mxu3 %v122_v50  ;;  %v242_v13 = vld [vmem:[#allocation8 + $0x440] sm:$0xff]  ;;  %v332_v14 = vld [vmem:[#allocation8 + $0x710] sm:$0xff]  ;;  %v163_v15 = vld [vmem:[#allocation8 + $0x1c8] sm:$0xff] }
  0x31   :  { %371 = vmatpush.msra.mxu0 %v116_v51  ;;  %390 = vmatpush.msra.mxu1 %v201_v53  ;;  %v248_v16 = vld [vmem:[#allocation8 + $0x470] sm:$0xff]  ;;  %v237_v17 = vld [vmem:[#allocation8 + $0x418] sm:$0xff]  ;;  %v327_v18 = vld [vmem:[#allocation8 + $0x6e8] sm:$0xff] }
  0x32   :  { %411 = vmatpush.msra.mxu2 %v276_v52  ;;  %431 = vmatpush.msra.mxu3 %v117_v54  ;;  %v158_v19 = vld [vmem:[#allocation8 + $0x1a0] sm:$0xff]  ;;  %v243_v20 = vld [vmem:[#allocation8 + $0x448] sm:$0xff]  ;;  %v232_v21 = vld [vmem:[#allocation8 + $0x3f0] sm:$0xff] }
  0x33   :  { %372 = vmatpush.msra.mxu0 %v111_v55  ;;  %391 = vmatpush.msra.mxu1 %v196_v57  ;;  %v322_v22 = vld [vmem:[#allocation8 + $0x6c0] sm:$0xff]  ;;  %v153_v23 = vld [vmem:[#allocation8 + $0x178] sm:$0xff]  ;;  %v227_v25 = vld [vmem:[#allocation8 + $0x3c8] sm:$0xff] }
  0x34   :  { %412 = vmatpush.msra.mxu2 %v271_v56  ;;  %432 = vmatpush.msra.mxu3 %v112_v58  ;;  %v238_v24 = vld [vmem:[#allocation8 + $0x420] sm:$0xff]  ;;  %v317_v26 = vld [vmem:[#allocation8 + $0x698] sm:$0xff]  ;;  %v148_v27 = vld [vmem:[#allocation8 + $0x150] sm:$0xff] }
  0x35   :  { %373 = vmatpush.msra.mxu0 %v106_v59  ;;  %392 = vmatpush.msra.mxu1 %v191_v63  ;;  %v233_v28 = vld [vmem:[#allocation8 + $0x3f8] sm:$0xff]  ;;  %v1051_v29 = vld [vmem:[#allocation2 + $0x10] sm:$0xff]  ;;  %v222_v30 = vld [vmem:[#allocation8 + $0x3a0] sm:$0xff] }
  0x36   :  { %413 = vmatpush.msra.mxu2 %v266_v60  ;;  %433 = vmatpush.msra.mxu3 %v107_v0  ;;  %v312_v31 = vld [vmem:[#allocation8 + $0x670] sm:$0xff]  ;;  %v143_v32 = vld [vmem:[#allocation8 + $0x128] sm:$0xff]  ;;  %v1053_v34 = vld [vmem:[#allocation2] sm:$0xff] }
  0x37   :  { %438 = vmatpush.msrb.mxu0 %v262_v61  ;;  %393 = vmatpush.msra.mxu1 %v186_v4  ;;  %v228_v33 = vld [vmem:[#allocation8 + $0x3d0] sm:$0xff]  ;;  %v217_v35 = vld [vmem:[#allocation8 + $0x378] sm:$0xff]  ;;  %v307_v36 = vld [vmem:[#allocation8 + $0x648] sm:$0xff] }
  0x38   :  { %478 = vmatpush.msrb.mxu2 %v183_v62  ;;  %498 = vmatpush.msrb.mxu3 %v263_v3  ;;  %v138_v37 = vld [vmem:[#allocation8 + $0x100] sm:$0xff]  ;;  %v223_v38 = vld [vmem:[#allocation8 + $0x3a8] sm:$0xff]  ;;  %v212_v40 = vld [vmem:[#allocation8 + $0x350] sm:$0xff] }
  0x39   :  { %439 = vmatpush.msrb.mxu0 %v257_v1  ;;  %458 = vmatpush.msrb.mxu1 %v342_v6  ;;  %v1057_v39 = vld [vmem:[#allocation2 + $0x8] sm:$0xff]  ;;  %v133_v42 = vld [vmem:[#allocation8 + $0xd8] sm:$0xff]  ;;  %v207_v44 = vld [vmem:[#allocation8 + $0x328] sm:$0xff] }
  0x3a   :  { %479 = vmatpush.msrb.mxu2 %v178_v2  ;;  %499 = vmatpush.msrb.mxu3 %v258_v8  ;;  %v302_v41 = vld [vmem:[#allocation8 + $0x620] sm:$0xff]  ;;  %v297_v45 = vld [vmem:[#allocation8 + $0x5f8] sm:$0xff]  ;;  %v128_v46 = vld [vmem:[#allocation8 + $0xb0] sm:$0xff] }
  0x3b   :  { %440 = vmatpush.msrb.mxu0 %v252_v5  ;;  %459 = vmatpush.msrb.mxu1 %v337_v10  ;;  %v218_v43 = vld [vmem:[#allocation8 + $0x380] sm:$0xff]  ;;  %v213_v47 = vld [vmem:[#allocation8 + $0x358] sm:$0xff]  ;;  %v292_v49 = vld [vmem:[#allocation8 + $0x5d0] sm:$0xff] }
  0x3c   :  { %480 = vmatpush.msrb.mxu2 %v173_v7  ;;  %500 = vmatpush.msrb.mxu3 %v253_v12  ;;  %v202_v48 = vld [vmem:[#allocation8 + $0x300] sm:$0xff]  ;;  %v123_v50 = vld [vmem:[#allocation8 + $0x88] sm:$0xff]  ;;  %v208_v51 = vld [vmem:[#allocation8 + $0x330] sm:$0xff] }
  0x3d   :  { %441 = vmatpush.msrb.mxu0 %v247_v9  ;;  %460 = vmatpush.msrb.mxu1 %v332_v14  ;;  %v197_v52 = vld [vmem:[#allocation8 + $0x2d8] sm:$0xff]  ;;  %v287_v53 = vld [vmem:[#allocation8 + $0x5a8] sm:$0xff]  ;;  %v118_v54 = vld [vmem:[#allocation8 + $0x60] sm:$0xff] }
  0x3e   :  { %481 = vmatpush.msrb.mxu2 %v168_v11  ;;  %501 = vmatpush.msrb.mxu3 %v248_v16  ;;  %v203_v55 = vld [vmem:[#allocation8 + $0x308] sm:$0xff]  ;;  %v192_v56 = vld [vmem:[#allocation8 + $0x2b0] sm:$0xff]  ;;  %v282_v57 = vld [vmem:[#allocation8 + $0x580] sm:$0xff] }
  0x3f   :  { %442 = vmatpush.msrb.mxu0 %v242_v13  ;;  %461 = vmatpush.msrb.mxu1 %v327_v18  ;;  %v113_v58 = vld [vmem:[#allocation8 + $0x38] sm:$0xff]  ;;  %v198_v59 = vld [vmem:[#allocation8 + $0x2e0] sm:$0xff]  ;;  %v187_v60 = vld [vmem:[#allocation8 + $0x288] sm:$0xff] }
  0x40   :  { %482 = vmatpush.msrb.mxu2 %v163_v15  ;;  %502 = vmatpush.msrb.mxu3 %v243_v20  ;;  %v277_v61 = vld [vmem:[#allocation8 + $0x558] sm:$0xff]  ;;  %v108_v62 = vld [vmem:[#allocation8 + $0x10] sm:$0xff]  ;;  %v343_v0 = vld [vmem:[#allocation8 + $0x768] sm:$0xff] }
  0x41   :  { %443 = vmatpush.msrb.mxu0 %v237_v17  ;;  %462 = vmatpush.msrb.mxu1 %v322_v22  ;;  %v193_v63 = vld [vmem:[#allocation8 + $0x2b8] sm:$0xff]  ;;  %v264_v1 = vld [vmem:[#allocation8 + $0x4f0] sm:$0xff]  ;;  %v338_v4 = vld [vmem:[#allocation8 + $0x740] sm:$0xff] }
  0x42   :  { %483 = vmatpush.msrb.mxu2 %v158_v19  ;;  %503 = vmatpush.msrb.mxu3 %v238_v24  ;;  %v272_v2 = vld [vmem:[#allocation8 + $0x530] sm:$0xff]  ;;  %v259_v5 = vld [vmem:[#allocation8 + $0x4c8] sm:$0xff]  ;;  %v333_v8 = vld [vmem:[#allocation8 + $0x718] sm:$0xff] }
  0x43   :  { %444 = vmatpush.msrb.mxu0 %v232_v21  ;;  %463 = vmatpush.msrb.mxu1 %v317_v26  ;;  %v188_v3 = vld [vmem:[#allocation8 + $0x290] sm:$0xff]  ;;  %v267_v7 = vld [vmem:[#allocation8 + $0x508] sm:$0xff]  ;;  %v254_v10 = vld [vmem:[#allocation8 + $0x4a0] sm:$0xff] }
  0x44   :  { %484 = vmatpush.msrb.mxu2 %v153_v23  ;;  %504 = vmatpush.msrb.mxu3 %v233_v28  ;;  %v344_v6 = vld [vmem:[#allocation8 + $0x770] sm:$0xff]  ;;  %v339_v11 = vld [vmem:[#allocation8 + $0x748] sm:$0xff]  ;;  %v249_v14 = vld [vmem:[#allocation8 + $0x478] sm:$0xff] }
  0x45   :  { %445 = vmatpush.msrb.mxu0 %v227_v25  ;;  %414 = vmatmul.f32.vlgmr.msra.gmra.mxu2 %v1051_v29  ;;  %v184_v9 = vld [vmem:[#allocation8 + $0x270] sm:$0xff]  ;;  %v179_v13 = vld [vmem:[#allocation8 + $0x248] sm:$0xff]  ;;  %v334_v15 = vld [vmem:[#allocation8 + $0x720] sm:$0xff] }
  0x46   :  { %485 = vmatpush.msrb.mxu2 %v148_v27  ;;  %464 = vmatpush.msrb.mxu1 %v312_v31  ;;  %v328_v12 = vld [vmem:[#allocation8 + $0x6f0] sm:$0xff]  ;;  %v323_v16 = vld [vmem:[#allocation8 + $0x6c8] sm:$0xff]  ;;  %v174_v17 = vld [vmem:[#allocation8 + $0x220] sm:$0xff] }
  0x47   :  { %446 = vmatpush.msrb.mxu0 %v222_v30  ;;  %505 = vmatpush.msrb.mxu3 %v228_v33  ;;  %v244_v18 = vld [vmem:[#allocation8 + $0x450] sm:$0xff]  ;;  %v329_v19 = vld [vmem:[#allocation8 + $0x6f8] sm:$0xff]  ;;  %v318_v21 = vld [vmem:[#allocation8 + $0x6a0] sm:$0xff] }
  0x48   :  { %486 = vmatpush.msrb.mxu2 %v143_v32  ;;  %374 = vmatmul.f32.vlgmr.msra.gmra.mxu0 %v1053_v34  ;;  %v169_v20 = vld [vmem:[#allocation8 + $0x1f8] sm:$0xff]  ;;  %v239_v22 = vld [vmem:[#allocation8 + $0x428] sm:$0xff]  ;;  %v324_v23 = vld [vmem:[#allocation8 + $0x6d0] sm:$0xff] }
  0x49   :  { %447 = vmatpush.msrb.mxu0 %v217_v35  ;;  %465 = vmatpush.msrb.mxu1 %v307_v36  ;;  %v313_v24 = vld [vmem:[#allocation8 + $0x678] sm:$0xff]  ;;  %v164_v25 = vld [vmem:[#allocation8 + $0x1d0] sm:$0xff]  ;;  %v234_v26 = vld [vmem:[#allocation8 + $0x400] sm:$0xff] }
  0x4a   :  { %487 = vmatpush.msrb.mxu2 %v138_v37  ;;  %506 = vmatpush.msrb.mxu3 %v223_v38  ;;  %v319_v27 = vld [vmem:[#allocation8 + $0x6a8] sm:$0xff]  ;;  %v308_v28 = vld [vmem:[#allocation8 + $0x650] sm:$0xff]  ;;  %v229_v31 = vld [vmem:[#allocation8 + $0x3d8] sm:$0xff] }
  0x4b   :  { %394 = vmatmul.f32.vlgmr.msra.gmra.mxu1 %v1057_v39  ;;  %448 = vmatpush.msrb.mxu0 %v212_v40  ;;  %v159_v30 = vld [vmem:[#allocation8 + $0x1a8] sm:$0xff]  ;;  %v314_v32 = vld [vmem:[#allocation8 + $0x680] sm:$0xff]  ;;  %v224_v36 = vld [vmem:[#allocation8 + $0x3b0] sm:$0xff] }
  0x4c   :  { %466 = vmatpush.msrb.mxu1 %v302_v41  ;;  %488 = vmatpush.msrb.mxu2 %v133_v42  ;;  %v303_v33 = vld [vmem:[#allocation8 + $0x628] sm:$0xff]  ;;  %v154_v35 = vld [vmem:[#allocation8 + $0x180] sm:$0xff]  ;;  %v309_v37 = vld [vmem:[#allocation8 + $0x658] sm:$0xff] }
  0x4d   :  { %507 = vmatpush.msrb.mxu3 %v218_v43  ;;  %449 = vmatpush.msrb.mxu0 %v207_v44  ;;  %v298_v38 = vld [vmem:[#allocation8 + $0x600] sm:$0xff]  ;;  %v149_v40 = vld [vmem:[#allocation8 + $0x158] sm:$0xff]  ;;  %v219_v41 = vld [vmem:[#allocation8 + $0x388] sm:$0xff] }
  0x4e   :  { %467 = vmatpush.msrb.mxu1 %v297_v45  ;;  %489 = vmatpush.msrb.mxu2 %v128_v46  ;;  %v304_v42 = vld [vmem:[#allocation8 + $0x630] sm:$0xff]  ;;  %v293_v43 = vld [vmem:[#allocation8 + $0x5d8] sm:$0xff]  ;;  %v214_v45 = vld [vmem:[#allocation8 + $0x360] sm:$0xff] }
  0x4f   :  { %508 = vmatpush.msrb.mxu3 %v213_v47  ;;  %450 = vmatpush.msrb.mxu0 %v202_v48  ;;  %v144_v44 = vld [vmem:[#allocation8 + $0x130] sm:$0xff]  ;;  %v299_v46 = vld [vmem:[#allocation8 + $0x608] sm:$0xff] }
  0x50   :  { %468 = vmatpush.msrb.mxu1 %v292_v49  ;;  %490 = vmatpush.msrb.mxu2 %v123_v50  ;;  %v288_v47 = vld [vmem:[#allocation8 + $0x5b0] sm:$0xff]  ;;  %v139_v48 = vld [vmem:[#allocation8 + $0x108] sm:$0xff]  ;;  %v209_v49 = vld [vmem:[#allocation8 + $0x338] sm:$0xff] }
  0x51   :  { %509 = vmatpush.msrb.mxu3 %v208_v51  ;;  %451 = vmatpush.msrb.mxu0 %v197_v52  ;;  %v294_v50 = vld [vmem:[#allocation8 + $0x5e0] sm:$0xff]  ;;  %v283_v51 = vld [vmem:[#allocation8 + $0x588] sm:$0xff] }
  0x52   :  { %469 = vmatpush.msrb.mxu1 %v287_v53  ;;  %491 = vmatpush.msrb.mxu2 %v118_v54  ;;  %v134_v52 = vld [vmem:[#allocation8 + $0xe0] sm:$0xff]  ;;  %v204_v53 = vld [vmem:[#allocation8 + $0x310] sm:$0xff]  ;;  %v289_v54 = vld [vmem:[#allocation8 + $0x5b8] sm:$0xff] }
  0x53   :  { %510 = vmatpush.msrb.mxu3 %v203_v55  ;;  %452 = vmatpush.msrb.mxu0 %v192_v56  ;;  %v278_v55 = vld [vmem:[#allocation8 + $0x560] sm:$0xff]  ;;  %v129_v56 = vld [vmem:[#allocation8 + $0xb8] sm:$0xff] }
  0x54   :  { %470 = vmatpush.msrb.mxu1 %v282_v57  ;;  %492 = vmatpush.msrb.mxu2 %v113_v58  ;;  %v199_v57 = vld [vmem:[#allocation8 + $0x2e8] sm:$0xff]  ;;  %v284_v58 = vld [vmem:[#allocation8 + $0x590] sm:$0xff] }
  0x55   :  { %511 = vmatpush.msrb.mxu3 %v198_v59  ;;  %453 = vmatpush.msrb.mxu0 %v187_v60  ;;  %v273_v59 = vld [vmem:[#allocation8 + $0x538] sm:$0xff]  ;;  %v124_v60 = vld [vmem:[#allocation8 + $0x90] sm:$0xff] }
  0x56   :  { %471 = vmatpush.msrb.mxu1 %v277_v61  ;;  %493 = vmatpush.msrb.mxu2 %v108_v62  ;;  %v194_v61 = vld [vmem:[#allocation8 + $0x2c0] sm:$0xff]  ;;  %v279_v62 = vld [vmem:[#allocation8 + $0x568] sm:$0xff] }
  0x57   :  { %512 = vmatpush.msrb.mxu3 %v193_v63  ;;  %518 = vmatpush.msra.mxu0 %v343_v0  ;;  %v268_v63 = vld [vmem:[#allocation8 + $0x510] sm:$0xff]  ;;  %v119_v0 = vld [vmem:[#allocation8 + $0x68] sm:$0xff] }
  0x58   :  { %558 = vmatpush.msra.mxu2 %v264_v1  ;;  %472 = vmatpush.msrb.mxu1 %v272_v2  ;;  %v189_v1 = vld [vmem:[#allocation8 + $0x298] sm:$0xff]  ;;  %v274_v2 = vld [vmem:[#allocation8 + $0x540] sm:$0xff] }
  0x59   :  { %513 = vmatpush.msrb.mxu3 %v188_v3  ;;  %519 = vmatpush.msra.mxu0 %v338_v4  ;;  %v114_v3 = vld [vmem:[#allocation8 + $0x40] sm:$0xff]  ;;  %v269_v4 = vld [vmem:[#allocation8 + $0x518] sm:$0xff] }
  0x5a   :  { %434 = vmatmul.f32.vlgmr.msra.gmra.mxu3 %v1053_v34  ;;  %559 = vmatpush.msra.mxu2 %v259_v5  ;;  %v345_v5 = vld [vmem:[#allocation8 + $0x778] sm:$0xff] }
  0x5b   :  { %578 = vmatpush.msra.mxu3 %v344_v6  ;;  %473 = vmatpush.msrb.mxu1 %v267_v7  ;;  %v109_v6 = vld [vmem:[#allocation8 + $0x18] sm:$0xff] }
  0x5c   :  { %520 = vmatpush.msra.mxu0 %v333_v8  ;;  %560 = vmatpush.msra.mxu2 %v254_v10  ;;  %v185_v7 = vld [vmem:[#allocation8 + $0x278] sm:$0xff]  ;;  %v340_v8 = vld [vmem:[#allocation8 + $0x750] sm:$0xff] }
  0x5d   :  { %538 = vmatpush.msra.mxu1 %v184_v9  ;;  %579 = vmatpush.msra.mxu3 %v339_v11  ;;  %v180_v9 = vld [vmem:[#allocation8 + $0x250] sm:$0xff]  ;;  %v265_v10 = vld [vmem:[#allocation8 + $0x4f8] sm:$0xff]  ;;  %v335_v11 = vld [vmem:[#allocation8 + $0x728] sm:$0xff] }
  0x5e   :  { %521 = vmatpush.msra.mxu0 %v328_v12  ;;  %561 = vmatpush.msra.mxu2 %v249_v14  ;;  %v175_v12 = vld [vmem:[#allocation8 + $0x228] sm:$0xff]  ;;  %v330_v14 = vld [vmem:[#allocation8 + $0x700] sm:$0xff] }
  0x5f   :  { %539 = vmatpush.msra.mxu1 %v179_v13  ;;  %580 = vmatpush.msra.mxu3 %v334_v15  ;;  %v260_v13 = vld [vmem:[#allocation8 + $0x4d0] sm:$0xff]  ;;  %v170_v15 = vld [vmem:[#allocation8 + $0x200] sm:$0xff] }
  0x60   :  { %522 = vmatpush.msra.mxu0 %v323_v16  ;;  %562 = vmatpush.msra.mxu2 %v244_v18  ;;  %v255_v16 = vld [vmem:[#allocation8 + $0x4a8] sm:$0xff]  ;;  %v165_v18 = vld [vmem:[#allocation8 + $0x1d8] sm:$0xff] }
  0x61   :  { %540 = vmatpush.msra.mxu1 %v174_v17  ;;  %581 = vmatpush.msra.mxu3 %v329_v19  ;;  %v325_v17 = vld [vmem:[#allocation8 + $0x6d8] sm:$0xff]  ;;  %v250_v19 = vld [vmem:[#allocation8 + $0x480] sm:$0xff] }
  0x62   :  { %454 = vmatmul.f32.vlgmr.msrb.gmra.mxu0 %v1057_v39  ;;  %563 = vmatpush.msra.mxu2 %v239_v22  ;;  %v245_v22 = vld [vmem:[#allocation8 + $0x458] sm:$0xff] }
  0x63   :  { %541 = vmatpush.msra.mxu1 %v169_v20  ;;  %523 = vmatpush.msra.mxu0 %v318_v21  ;;  %v320_v20 = vld [vmem:[#allocation8 + $0x6b0] sm:$0xff] }
  0x64   :  { %582 = vmatpush.msra.mxu3 %v324_v23  ;;  %474 = vmatmul.f32.vlgmr.msrb.gmra.mxu1 %v1051_v29  ;;  %v160_v21 = vld [vmem:[#allocation8 + $0x1b0] sm:$0xff]  ;;  %v315_v23 = vld [vmem:[#allocation8 + $0x688] sm:$0xff] }
  0x65   :  { %524 = vmatpush.msra.mxu0 %v313_v24  ;;  %542 = vmatpush.msra.mxu1 %v164_v25  ;;  %v155_v24 = vld [vmem:[#allocation8 + $0x188] sm:$0xff]  ;;  %v240_v25 = vld [vmem:[#allocation8 + $0x430] sm:$0xff] }
  0x66   :  { %564 = vmatpush.msra.mxu2 %v234_v26  ;;  %583 = vmatpush.msra.mxu3 %v319_v27  ;;  %v310_v26 = vld [vmem:[#allocation8 + $0x660] sm:$0xff] }
  0x67   :  { %525 = vmatpush.msra.mxu0 %v308_v28  ;;  %543 = vmatpush.msra.mxu1 %v159_v30  ;;  %v150_v27 = vld [vmem:[#allocation8 + $0x160] sm:$0xff]  ;;  %v235_v28 = vld [vmem:[#allocation8 + $0x408] sm:$0xff]  ;;  %v305_v30 = vld [vmem:[#allocation8 + $0x638] sm:$0xff] }
  0x68   :  { %565 = vmatpush.msra.mxu2 %v229_v31  ;;  %584 = vmatpush.msra.mxu3 %v314_v32  ;;  %v145_v31 = vld [vmem:[#allocation8 + $0x138] sm:$0xff]  ;;  %v230_v32 = vld [vmem:[#allocation8 + $0x3e0] sm:$0xff] }
  0x69   :  { %526 = vmatpush.msra.mxu0 %v303_v33  ;;  %544 = vmatpush.msra.mxu1 %v154_v35  ;;  %v300_v33 = vld [vmem:[#allocation8 + $0x610] sm:$0xff] }
  0x6a   :  { %566 = vmatpush.msra.mxu2 %v224_v36  ;;  %585 = vmatpush.msra.mxu3 %v309_v37  ;;  %v140_v35 = vld [vmem:[#allocation8 + $0x110] sm:$0xff]  ;;  %v225_v36 = vld [vmem:[#allocation8 + $0x3b8] sm:$0xff]  ;;  %v295_v37 = vld [vmem:[#allocation8 + $0x5e8] sm:$0xff] }
  0x6b   :  { %527 = vmatpush.msra.mxu0 %v298_v38  ;;  %545 = vmatpush.msra.mxu1 %v149_v40  ;;  %v135_v38 = vld [vmem:[#allocation8 + $0xe8] sm:$0xff]  ;;  %v220_v40 = vld [vmem:[#allocation8 + $0x390] sm:$0xff] }
  0x6c   :  { %567 = vmatpush.msra.mxu2 %v219_v41  ;;  %586 = vmatpush.msra.mxu3 %v304_v42  ;;  %v290_v41 = vld [vmem:[#allocation8 + $0x5c0] sm:$0xff] }
  0x6d   :  { %528 = vmatpush.msra.mxu0 %v293_v43  ;;  %546 = vmatpush.msra.mxu1 %v144_v44  ;;  %v130_v42 = vld [vmem:[#allocation8 + $0xc0] sm:$0xff]  ;;  %v215_v43 = vld [vmem:[#allocation8 + $0x368] sm:$0xff]  ;;  %v285_v44 = vld [vmem:[#allocation8 + $0x598] sm:$0xff] }
  0x6e   :  { %568 = vmatpush.msra.mxu2 %v214_v45  ;;  %587 = vmatpush.msra.mxu3 %v299_v46  ;;  %v125_v45 = vld [vmem:[#allocation8 + $0x98] sm:$0xff]  ;;  %v210_v46 = vld [vmem:[#allocation8 + $0x340] sm:$0xff] }
  0x6f   :  { %494 = vmatmul.f32.vlgmr.msrb.gmra.mxu2 %v1053_v34  ;;  %529 = vmatpush.msra.mxu0 %v288_v47  ;;  %v280_v47 = vld [vmem:[#allocation8 + $0x570] sm:$0xff] }
  0x70   :  { %547 = vmatpush.msra.mxu1 %v139_v48  ;;  %569 = vmatpush.msra.mxu2 %v209_v49  ;;  %v120_v48 = vld [vmem:[#allocation8 + $0x70] sm:$0xff]  ;;  %v205_v49 = vld [vmem:[#allocation8 + $0x318] sm:$0xff] }
  0x71   :  { %588 = vmatpush.msra.mxu3 %v294_v50  ;;  %530 = vmatpush.msra.mxu0 %v283_v51  ;;  %v275_v50 = vld [vmem:[#allocation8 + $0x548] sm:$0xff] }
  0x72   :  { %514 = vmatmul.f32.vlgmr.msrb.gmra.mxu3 %v1057_v39  ;;  %548 = vmatpush.msra.mxu1 %v134_v52  ;;  %v115_v51 = vld [vmem:[#allocation8 + $0x48] sm:$0xff]  ;;  %v200_v52 = vld [vmem:[#allocation8 + $0x2f0] sm:$0xff] }
  0x73   :  { %570 = vmatpush.msra.mxu2 %v204_v53  ;;  %589 = vmatpush.msra.mxu3 %v289_v54  ;;  %v270_v53 = vld [vmem:[#allocation8 + $0x520] sm:$0xff] }
  0x74   :  { %531 = vmatpush.msra.mxu0 %v278_v55  ;;  %549 = vmatpush.msra.mxu1 %v129_v56  ;;  %v110_v54 = vld [vmem:[#allocation8 + $0x20] sm:$0xff]  ;;  %v195_v55 = vld [vmem:[#allocation8 + $0x2c8] sm:$0xff] }
  0x75   :  { %571 = vmatpush.msra.mxu2 %v199_v57  ;;  %590 = vmatpush.msra.mxu3 %v284_v58  ;;  %v190_v56 = vld [vmem:[#allocation8 + $0x2a0] sm:$0xff] }
  0x76   :  { %532 = vmatpush.msra.mxu0 %v273_v59  ;;  %550 = vmatpush.msra.mxu1 %v124_v60  ;;  %v1072_v57 = vld [vmem:[#allocation10] sm:$0x1f] }
  0x77   :  { %572 = vmatpush.msra.mxu2 %v194_v61  ;;  %591 = vmatpush.msra.mxu3 %v279_v62  ;;  %v348_v58 = vperm.slane %v1072_v57, 0  ;;  %v349_v62 = vperm.slane %v1072_v57, 1 }
  0x78   :  { %533 = vmatpush.msra.mxu0 %v268_v63  ;;  %551 = vmatpush.msra.mxu1 %v119_v0  ;;  %v1076_v63 = vld [vmem:[#allocation5] sm:$0xff] }
  0x79   :  { %573 = vmatpush.msra.mxu2 %v189_v1  ;;  %592 = vmatpush.msra.mxu3 %v274_v2  ;;  %v802_v2 = vld [vmem:[%s1122_s5] ss:$0 sm:$0xff] }
  0x7a   :  { %534 = vmatmul.f32.vlgmr.msra.gmra.mxu0 %v1051_v29  ;;  %574 = vmatmul.f32.vlgmr.msra.gmra.mxu2 %v1057_v39 }
  0x7b   :  { %552 = vmatpush.msra.mxu1 %v114_v3  ;;  %593 = vmatpush.msra.mxu3 %v269_v4 }
  0x7c   :  { %638 = vmatpush.msrb.mxu2 %v345_v5  ;;  %594 = vmatmul.f32.vlgmr.msra.gmra.mxu3 %v1051_v29 }
  0x7d   :  { %553 = vmatpush.msra.mxu1 %v109_v6  ;;  %598 = vmatpush.msrb.mxu0 %v185_v7 }
  0x7e   :  { %639 = vmatpush.msrb.mxu2 %v340_v8  ;;  %554 = vmatmul.f32.vlgmr.msra.gmra.mxu1 %v1053_v34 }
  0x7f   :  { %599 = vmatpush.msrb.mxu0 %v180_v9  ;;  %618 = vmatpush.msrb.mxu1 %v265_v10 }
  0x80   :  { %640 = vmatpush.msrb.mxu2 %v335_v11 }
  0x81   :  { %600 = vmatpush.msrb.mxu0 %v175_v12  ;;  %619 = vmatpush.msrb.mxu1 %v260_v13 }
  0x82   :  { %641 = vmatpush.msrb.mxu2 %v330_v14 }
  0x83   :  { %601 = vmatpush.msrb.mxu0 %v170_v15  ;;  %620 = vmatpush.msrb.mxu1 %v255_v16  ;;  %v350_v16 = vperm.slane %v1072_v57, 2 }
  0x84   :  { %642 = vmatpush.msrb.mxu2 %v325_v17 }
  0x85   :  { %602 = vmatpush.msrb.mxu0 %v165_v18  ;;  %621 = vmatpush.msrb.mxu1 %v250_v19  ;;  %v804_v19 = vld [vmem:[%s1124_s7] ss:$0 sm:$0xff] }
  0x86   :  { %643 = vmatpush.msrb.mxu2 %v320_v20 }
  0x87   :  { %603 = vmatpush.msrb.mxu0 %v160_v21  ;;  %622 = vmatpush.msrb.mxu1 %v245_v22 }
  0x88   :  { %644 = vmatpush.msrb.mxu2 %v315_v23 }
  0x89   :  { %604 = vmatpush.msrb.mxu0 %v155_v24  ;;  %623 = vmatpush.msrb.mxu1 %v240_v25 }
  0x8a   :  { %645 = vmatpush.msrb.mxu2 %v310_v26 }
  0x8b   :  { %605 = vmatpush.msrb.mxu0 %v150_v27  ;;  %624 = vmatpush.msrb.mxu1 %v235_v28 }
  0x8c   :  { %646 = vmatpush.msrb.mxu2 %v305_v30 }
  0x8d   :  { %606 = vmatpush.msrb.mxu0 %v145_v31  ;;  %625 = vmatpush.msrb.mxu1 %v230_v32 }
  0x8e   :  { %647 = vmatpush.msrb.mxu2 %v300_v33 }
  0x8f   :  { %607 = vmatpush.msrb.mxu0 %v140_v35  ;;  %626 = vmatpush.msrb.mxu1 %v225_v36  ;;  %v351_v35 = vperm.slane %v1072_v57, 3 }
  0x90   :  { %648 = vmatpush.msrb.mxu2 %v295_v37 }
  0x91   :  { %608 = vmatpush.msrb.mxu0 %v135_v38  ;;  %627 = vmatpush.msrb.mxu1 %v220_v40 }
  0x92   :  { %649 = vmatpush.msrb.mxu2 %v290_v41 }
  0x93   :  { %609 = vmatpush.msrb.mxu0 %v130_v42  ;;  %628 = vmatpush.msrb.mxu1 %v215_v43 }
  0x94   :  { %650 = vmatpush.msrb.mxu2 %v285_v44 }
  0x95   :  { %610 = vmatpush.msrb.mxu0 %v125_v45  ;;  %629 = vmatpush.msrb.mxu1 %v210_v46 }
  0x96   :  { %651 = vmatpush.msrb.mxu2 %v280_v47 }
  0x97   :  { %611 = vmatpush.msrb.mxu0 %v120_v48  ;;  %630 = vmatpush.msrb.mxu1 %v205_v49 }
  0x98   :  { %652 = vmatpush.msrb.mxu2 %v275_v50 }
  0x99   :  { %612 = vmatpush.msrb.mxu0 %v115_v51  ;;  %631 = vmatpush.msrb.mxu1 %v200_v52 }
  0x9a   :  { %653 = vmatpush.msrb.mxu2 %v270_v53 }
  0x9b   :  { %654 = vmatmul.f32.vlgmr.msrb.gmra.mxu2 %v1051_v29  ;;  %613 = vmatpush.msrb.mxu0 %v110_v54  ;;  %v1078_v29 = vld [vmem:[#allocation7] sm:$0xff] }
  0x9c   :  { %632 = vmatpush.msrb.mxu1 %v195_v55  ;;  %614 = vmatmul.f32.vlgmr.msrb.gmra.mxu0 %v1053_v34  ;;  %v803_v34 = vld [vmem:[%s1123_s6] ss:$0 sm:$0xff]  ;;  %v715_v25 = vmul.f32 %v804_v19, %v1078_v29 }
  0x9d   :  { %v690_v7 = vmul.f32 %v803_v34, %v1076_v63  ;;  %v805_v19 = vld [vmem:[%s1125_s8] ss:$0 sm:$0xff]  ;;  %s985_s8 = smov [#allocation11]  }
  0x9e   :  { %633 = vmatpush.msrb.mxu1 %v190_v56  ;;  %s776_s15 = sshll.u32 %s985_s8, 4  ;;  %s777_s15 = int_to_ptr.vmem [resolvable:$true] %s776_s15 }
  0x9f   :  { %634 = vmatmul.f32.vlgmr.msrb.gmra.mxu1 %v1057_v39  ;;  %v661_v39 = vadd.f32 %v1078_v29, %v1076_v63 }
  0xa1   :  { %v665_v10 = vmul.f32 %v802_v2, %v661_v39 }
  0xc5   :  { %v375_v59 = vpop.f32.mrf.mxu0 }
  0xc6   :  { %v376_v61 = vadd.f32 %v375_v59, %v348_v58 }
  0xc8   :  { %v395_v60 = vpop.f32.mrf.mxu1  ;;  %v415_v4 = vpop.f32.mrf.mxu2 }
  0xc9   :  { %v396_v1 = vadd.f32 %v395_v60, %v376_v61 }
  0xcb   :  { %v416_v9 = vadd.f32 %v415_v4, %v396_v1 }
  0xcd   :  { %v666_v13 = vadd.f32 %v665_v10, %v416_v9 }
  0xcf   :  { %v790_v15 = vmul.f32 -1.442695, %v666_v13 }
  0xdd   :  { %v435_v0 = vpop.f32.mrf.mxu3 }
  0xde   :  { %v436_v3 = vadd.f32 %v435_v0, %v349_v62 }
  0xdf   :  { %v455_v5 = vpop.f32.mrf.mxu0 }
  0xe0   :  { %v456_v6 = vadd.f32 %v455_v5, %v436_v3 }
  0xe1   :  { %v475_v8 = vpop.f32.mrf.mxu1 }
  0xe2   :  { %v476_v11 = vadd.f32 %v475_v8, %v456_v6  ;;  %v352_v8 = vperm.slane %v1072_v57, 4 }
  0xe4   :  { %v691_v12 = vadd.f32 %v690_v7, %v476_v11 }
  0xe6   :  { %v791_v14 = vmul.f32 -1.442695, %v691_v12 }
  0xe8   :  { %806 = vpow2.f32 %v791_v14 }
  0xe9   :  { %808 = vpow2.f32 %v790_v15 }
  0xee   :  { %v807_v17 = vpop.eup %806 }
  0xef   :  { %v809_v21 = vpop.eup %808  ;;  %v695_v22 = vadd.f32 1.0, %v807_v17 }
  0xf0   :  { %v670_v26 = vadd.f32 1.0, %v809_v21 }
  0xf1   :  { %810 = vrcp.f32 %v695_v22  ;;  %vm701_vm0 = vweird.f32 %v695_v22  ;;  %v707_v51 = vand.u32 2147483648, %v695_v22  ;;  %v705_v53 = vand.u32 2147483647, %v695_v22 }
  0xf2   :  { %v495_v18 = vpop.f32.mrf.mxu2  ;;  %812 = vrcp.f32 %v670_v26  ;;  %vm676_vm2 = vweird.f32 %v670_v26  ;;  %v680_v56 = vand.u32 2147483647, %v670_v26  ;;  %v682_v61 = vand.u32 2147483648, %v670_v26 }
  0xf3   :  { %v496_v20 = vadd.f32 %v495_v18, %v350_v16  ;;  %v708_v62 = vor.u32 1.1754944e-38, %v707_v51  ;;  %vm706_vm5 = vcmp.eq.f32.partialorder %v705_v53, 8.507059e+37 }
  0xf4   :  { %vm681_vm9 = vcmp.eq.f32.partialorder %v680_v56, 8.507059e+37  ;;  %v683_v5 = vor.u32 1.1754944e-38, %v682_v61 }
  0xf5   :  { %v515_v23 = vpop.f32.mrf.mxu3 }
  0xf6   :  { %v516_v24 = vadd.f32 %v515_v23, %v496_v20 }
  0xf7   :  { %v535_v27 = vpop.f32.mrf.mxu0  ;;  %v811_v32 = vpop.eup %810 }
  0xf8   :  { %v536_v28 = vadd.f32 %v535_v27, %v516_v24  ;;  %v813_v33 = vpop.eup %812  ;;  %v697_v36 = vmul.f32 %v811_v32, %v695_v22  ;;  %vm702_vm1 = vweird.f32 %v811_v32 }
  0xf9   :  { %v672_v40 = vmul.f32 %v813_v33, %v670_v26  ;;  %vm1095_vm3 = vmor %vm701_vm0, %vm702_vm1  ;;  %vm677_vm4 = vweird.f32 %v813_v33 }
  0xfa   :  { %v716_v30 = vadd.f32 %v715_v25, %v536_v28  ;;  %v698_v43 = vsub.f32 1.0, %v697_v36  ;;  %vm1102_vm7 = vmor %vm676_vm2, %vm677_vm4 }
  0xfb   :  { %v555_v37 = vpop.f32.mrf.mxu1  ;;  %v673_v45 = vsub.f32 1.0, %v672_v40 }
  0xfc   :  { %v792_v31 = vmul.f32 -1.442695, %v716_v30  ;;  %v556_v42 = vadd.f32 %v555_v37, %v351_v35  ;;  %v699_v47 = vmul.f32 %v811_v32, %v698_v43 }
  0xfd   :  { %v575_v44 = vpop.f32.mrf.mxu2  ;;  %v674_v49 = vmul.f32 %v813_v33, %v673_v45 }
  0xfe   :  { %814 = vpow2.f32 %v792_v31  ;;  %v576_v46 = vadd.f32 %v575_v44, %v556_v42  ;;  %v700_v55 = vadd.f32 %v811_v32, %v699_v47 }
  0xff   :  { %v595_v48 = vpop.f32.mrf.mxu3  ;;  %v675_v60 = vadd.f32 %v813_v33, %v674_v49 }
 0x100   :  { %v596_v52 = vadd.f32 %v595_v48, %v576_v46  ;;  %v704_v1 = vsel %vm1095_vm3, %v811_v32, %v700_v55 }
 0x101   :  { %v709_v6 = vsel %vm706_vm5, %v708_v62, %v704_v1  ;;  %v679_v7 = vsel %vm1102_vm7, %v813_v33, %v675_v60 }
 0x102   :  { %v736_v12 = vmul.f32 %v709_v6, %v1076_v63  ;;  %v684_v14 = vsel %vm681_vm9, %v683_v5, %v679_v7 }
 0x104   :  { %v815_v38 = vpop.eup %814 }
 0x105   :  { %v720_v41 = vadd.f32 1.0, %v815_v38 }
 0x107   :  { %816 = vrcp.f32 %v720_v41  ;;  %v732_v34 = vand.u32 2147483648, %v720_v41  ;;  %v730_v39 = vand.u32 2147483647, %v720_v41  ;;  %vm726_vm8 = vweird.f32 %v720_v41 }
 0x108   :  { %818 = vtanh.f32 %v596_v52 }
 0x109   :  { %v733_v4 = vor.u32 1.1754944e-38, %v732_v34  ;;  %vm731_vm11 = vcmp.eq.f32.partialorder %v730_v39, 8.507059e+37 }
 0x10d   :  { %v817_v50 = vpop.eup %816 }
 0x10e   :  { %v722_v54 = vmul.f32 %v817_v50, %v720_v41  ;;  %vm727_vm6 = vweird.f32 %v817_v50  ;;  %v819_v10 = vpop.eup %818 }
 0x10f   :  { %vm728_vm10 = vmor %vm726_vm8, %vm727_vm6  ;;  %v740_v16 = vmul.f32 %v819_v10, %v684_v14 }
 0x110   :  { %v723_v59 = vsub.f32 1.0, %v722_v54 }
 0x112   :  { %v724_v0 = vmul.f32 %v817_v50, %v723_v59 }
 0x114   :  { %v725_v3 = vadd.f32 %v817_v50, %v724_v0 }
 0x116   :  { %v729_v9 = vsel %vm728_vm10, %v817_v50, %v725_v3 }
 0x117   :  { %v734_v11 = vsel %vm731_vm11, %v733_v4, %v729_v9 }
 0x118   :  { %v737_v13 = vmul.f32 %v734_v11, %v1078_v29 }
 0x119   :  { %v615_v15 = vpop.f32.mrf.mxu0 }
 0x11a   :  { %v616_v17 = vadd.f32 %v615_v15, %v352_v8  ;;  %v738_v18 = vadd.f32 %v737_v13, %v736_v12 }
 0x11c   :  { %v635_v20 = vpop.f32.mrf.mxu1  ;;  %v741_v21 = vadd.f32 %v740_v16, %v738_v18 }
 0x11d   :  { %v636_v57 = vadd.f32 %v635_v20, %v616_v17 }
 0x11e   :  { %v655_v22 = vpop.f32.mrf.mxu2  ;;  %v746_v23 = vmul.f32 %v805_v19, %v741_v21  ;;  %770 = vst [vmem:[#allocation11 + $0x8] sm:$0xff] %v741_v21 }
 0x11f   :  { %v656_v24 = vadd.f32 %v655_v22, %v636_v57 }
 0x121   :  { %v747_v25 = vadd.f32 %v746_v23, %v656_v24 }
 0x123   :  { %v793_v63 = vmul.f32 -1.442695, %v747_v25 }
 0x125   :  { %820 = vpow2.f32 %v793_v63 }
 0x12b   :  { %v821_v29 = vpop.eup %820 }
 0x12c   :  { %v751_v26 = vadd.f32 1.0, %v821_v29 }
 0x12e   :  { %822 = vrcp.f32 %v751_v26  ;;  %v763_v31 = vand.u32 2147483648, %v751_v26  ;;  %v761_v33 = vand.u32 2147483647, %v751_v26  ;;  %vm757_vm13 = vweird.f32 %v751_v26 }
 0x12f   :  { %824 = vtanh.f32 %v741_v21 }
 0x130   :  { %v764_v36 = vor.u32 1.1754944e-38, %v763_v31  ;;  %vm762_vm15 = vcmp.eq.f32.partialorder %v761_v33, 8.507059e+37 }
 0x134   :  { %v823_v27 = vpop.eup %822 }
 0x135   :  { %v753_v28 = vmul.f32 %v823_v27, %v751_v26  ;;  %vm758_vm12 = vweird.f32 %v823_v27  ;;  %v825_v38 = vpop.eup %824 }
 0x136   :  { %vm759_vm14 = vmor %vm757_vm13, %vm758_vm12 }
 0x137   :  { %v754_v30 = vsub.f32 1.0, %v753_v28 }
 0x139   :  { %v755_v32 = vmul.f32 %v823_v27, %v754_v30 }
 0x13b   :  { %v756_v35 = vadd.f32 %v823_v27, %v755_v32 }
 0x13d   :  { %v760_v37 = vsel %vm759_vm14, %v823_v27, %v756_v35 }
 0x13e   :  { %v765_v40 = vsel %vm762_vm15, %v764_v36, %v760_v37 }
 0x13f   :  { %v768_v41 = vmul.f32 %v825_v38, %v765_v40 }
 0x141   :  { %769 = vst [vmem:[#allocation11] sm:$0xff] %v768_v41 }
 0x142   :  { %781 = dma.vmem_to_hbm [thread:$0]  %s777_s15, 256, %s779_s18, [#allocation4]  }
 0x143   :  { %976 = dma.done.wait [#allocation4], 256  }
 0x144   :  { %977 = vsyncadd [#allocation4], 4294967040 }
 0x145   :  { %786 = vsyncpa [#allocation3], 1 }
 0x146   :  { %787 = vsyncpa [#allocation6], 1 }
 0x147   :  { %788 = vsyncpa [#allocation9], 1 }
 0x148   :  { %789 = vsyncpa [#allocation4], 1 }

</bundles_post_ra>
